<compile_context>
chip_gen: v5e
topology: v5e:2x2
jax: 0.10.0
libtpu: 0.0.40
codegen_flags: <defaults>
</compile_context>

<pallas_src>
import functools

import jax
import jax.numpy as jnp
from jax.experimental import pallas as pl
from jax.experimental.pallas import tpu as pltpu


def channel_attention_kernel(x_ref, w1_ref, b1_ref, w2_ref, b2_ref, o_ref,
                             acc_ref, *, inv_hw, true_hw, needs_mask):
    """One (batch-tile, HW-tile) grid step.

    x_ref:   (TB, C, T_HW)    spatial tile (channels on sublanes, HW on lanes)
    w1_ref:  (C, Cr) f32      fc1 weight (1x1 conv, transposed)
    b1_ref:  (1, Cr) f32
    w2_ref:  (Cr, C) f32      fc2 weight (1x1 conv, transposed)
    b2_ref:  (1, C)  f32
    o_ref:   (TB, C)          sigmoid attention scores
    acc_ref: (TB, C, 128) f32 lane-resident partial-sum accumulator (scratch)
    """
    k = pl.program_id(1)

    @pl.when(k == 0)
    def _init():
        acc_ref[...] = jnp.zeros_like(acc_ref)

    t_hw = x_ref.shape[-1]
    base = k * t_hw                       # global lane offset of this tile
    n_groups = t_hw // 128
    rem = t_hw - n_groups * 128

    def load_slice(lo, width):
        sl = x_ref[:, :, lo:lo + width].astype(jnp.float32)
        if needs_mask:
            # Zero the lanes past the true spatial extent (replaces host pad).
            lane = jax.lax.broadcasted_iota(jnp.int32, sl.shape, 2)
            sl = jnp.where(base + lo + lane < true_hw, sl, 0.0)
        return sl

    # Pure VPU adds per grid step; the single cross-lane (XLU) reduce is
    # deferred to the epilogue so the steady state stays DMA-bound.
    for g in range(n_groups):
        acc_ref[...] += load_slice(g * 128, 128)
    if rem:  # only occurs on a full-extent (single-step) HW block
        tail_sum = jnp.sum(load_slice(n_groups * 128, rem),
                           axis=-1, keepdims=True)                # (TB, C, 1)
        lane = jax.lax.broadcasted_iota(jnp.int32, acc_ref.shape, 2)
        acc_ref[...] += jnp.where(lane == 0, tail_sum, 0.0)

    @pl.when(k == pl.num_programs(1) - 1)
    def _epilogue():
        gap = jnp.sum(acc_ref[...], axis=-1) * inv_hw              # (TB, C)
        h = jnp.dot(gap, w1_ref[...], preferred_element_type=jnp.float32)
        h = jnp.maximum(h + b1_ref[...], 0.0)
        o = jnp.dot(h, w2_ref[...], preferred_element_type=jnp.float32)
        o = o + b2_ref[...]
        o_ref[...] = jax.nn.sigmoid(o).astype(o_ref.dtype)


def channel_attention(x, w1, b1, w2, b2, *,
                      vmem_budget_per_buffer=8 << 20, max_tile_hw=4096):
    """x: (B, C, H, W) -> (B, C, 1, 1) channel-attention map."""
    B, C, H, W = x.shape
    HW = H * W
    Cr = w1.shape[1]
    itemsize = jnp.dtype(x.dtype).itemsize

    # Batch tiling (parallel axis).  tb=8 keeps the (tb, C) output block
    # sublane-aligned; otherwise use the full batch (full-extent is exempt).
    tb = 8 if (B % 8 == 0 and B >= 8) else B
    nb = B // tb
    # TODO(synk): when nb == 1 on v7x one TensorCore idles; a parallel C-tile
    # axis (GAP in-kernel, MLP in the wrapper) would recover it for tiny B.

    # Spatial tiling: full-extent HW block if it fits the per-buffer VMEM
    # budget (single step, no masking); otherwise the largest 128-aligned
    # tile (capped at max_tile_hw) with in-kernel tail masking.
    max_tile_hw = max(128, (int(max_tile_hw) // 128) * 128)
    row_bytes = tb * C * itemsize
    if HW <= 128 or (HW <= max_tile_hw and row_bytes * HW <= vmem_budget_per_buffer):
        t_hw = HW
    else:
        lanes = max(128, (int(vmem_budget_per_buffer // row_bytes) // 128) * 128)
        t_hw = int(min(max_tile_hw, lanes, (HW // 128) * 128))
    n_hw = pl.cdiv(HW, t_hw)
    needs_mask = (HW % t_hw) != 0

    x_flat = x.reshape(B, C, HW)          # metadata-only reshape, no HBM pass

    # Hoisted casts: tiny weight/bias arrays live in f32 for the epilogue MLP.
    w1f = w1.astype(jnp.float32)
    w2f = w2.astype(jnp.float32)
    b1f = b1.reshape(1, Cr).astype(jnp.float32)
    b2f = b2.reshape(1, C).astype(jnp.float32)

    kernel = functools.partial(channel_attention_kernel,
                               inv_hw=float(1.0 / HW),
                               true_hw=HW, needs_mask=needs_mask)

    # VMEM footprint estimate -> explicit scoped-VMEM limit (portable).
    est = (2 * tb * C * t_hw * itemsize            # double-buffered x blocks
           + 2 * (C * Cr + Cr + Cr * C + C) * 4    # weights / biases
           + 2 * tb * C * itemsize                 # output block
           + tb * C * 128 * 4)                     # accumulator scratch
    vmem_limit = int(min(max(est + (8 << 20), 32 << 20), 60 << 20))

    cost = pl.CostEstimate(
        flops=int(B * C * HW + 2 * B * C * Cr + 2 * B * Cr * C),
        transcendentals=int(B * C),
        bytes_accessed=int(B * C * HW * itemsize + (2 * C * Cr + Cr + C) * 4
                           + B * C * itemsize),
    )

    out = pl.pallas_call(
        kernel,
        out_shape=jax.ShapeDtypeStruct((B, C), x.dtype),
        grid_spec=pltpu.PrefetchScalarGridSpec(
            num_scalar_prefetch=0,
            grid=(nb, n_hw),
            in_specs=[
                pl.BlockSpec((tb, C, t_hw), lambda b, k: (b, 0, k)),
                pl.BlockSpec((C, Cr), lambda b, k: (0, 0)),
                pl.BlockSpec((1, Cr), lambda b, k: (0, 0)),
                pl.BlockSpec((Cr, C), lambda b, k: (0, 0)),
                pl.BlockSpec((1, C), lambda b, k: (0, 0)),
            ],
            out_specs=pl.BlockSpec((tb, C), lambda b, k: (b, 0)),
            scratch_shapes=[pltpu.VMEM((tb, C, 128), jnp.float32)],
        ),
        compiler_params=pltpu.CompilerParams(
            dimension_semantics=("parallel", "arbitrary"),
            vmem_limit_bytes=vmem_limit),
        cost_estimate=cost,
    )(x_flat, w1f, b1f, w2f, b2f)

    return out.reshape(B, C, 1, 1)


def init_params(key, in_channels, reduction=16):
    """Synthetic init matching the PyTorch module's shapes.

    PyTorch: fc1.weight (C//r, C, 1, 1), fc1.bias (C//r,)
             fc2.weight (C, C//r, 1, 1), fc2.bias (C,)
    Stored as dense matmul matrices:
             w1 = fc1.weight.reshape(C//r, C).T  -> (C, C//r)
             w2 = fc2.weight.reshape(C, C//r).T  -> (C//r, C)
    """
    mid = max(1, in_channels // reduction)
    k1, k2, k3, k4 = jax.random.split(key, 4)
    bound1 = 1.0 / (in_channels ** 0.5)
    bound2 = 1.0 / (mid ** 0.5)
    w1 = jax.random.uniform(k1, (in_channels, mid), jnp.float32, -bound1, bound1)
    b1 = jax.random.uniform(k2, (mid,), jnp.float32, -bound1, bound1)
    w2 = jax.random.uniform(k3, (mid, in_channels), jnp.float32, -bound2, bound2)
    b2 = jax.random.uniform(k4, (in_channels,), jnp.float32, -bound2, bound2)
    return w1, b1, w2, b2


def channel_attention_ref(x, w1, b1, w2, b2):
    """Pure-JAX reference for correctness checking."""
    gap = jnp.mean(x, axis=(2, 3))                    # (B, C)
    h = jnp.maximum(gap @ w1 + b1[None, :], 0.0)      # (B, C//r)
    o = jax.nn.sigmoid(h @ w2 + b2[None, :])          # (B, C)
    return o.reshape(x.shape[0], x.shape[1], 1, 1)


if __name__ == "__main__":
    key = jax.random.PRNGKey(0)
    kx, kp, kx2 = jax.random.split(key, 3)

    # --- primary test: full-extent HW block path --------------------------
    B, C, H, W = 2, 64, 16, 16          # in_channels=64, reduction=16 -> mid=4
    x = jax.random.normal(kx, (B, C, H, W), dtype=jnp.float32)
    w1, b1, w2, b2 = init_params(kp, C, reduction=16)

    out = channel_attention(x, w1, b1, w2, b2)
    out = jax.block_until_ready(out)
    ref = channel_attention_ref(x, w1, b1, w2, b2)
    assert out.shape == (B, C, 1, 1)
    assert jnp.allclose(out, ref, atol=1e-5, rtol=1e-5), "mismatch (full block)"

    # --- secondary test: tiled HW axis (2 steps, init/accumulate/epilogue) -
    out2 = channel_attention(x, w1, b1, w2, b2, max_tile_hw=128)
    out2 = jax.block_until_ready(out2)
    assert jnp.allclose(out2, ref, atol=1e-5, rtol=1e-5), "mismatch (tiled)"

    # --- third test: partial last tile -> in-kernel tail-lane masking ------
    B3, H3, W3 = 8, 10, 15              # HW=150, t_hw=128 -> masked last tile
    x3 = jax.random.normal(kx2, (B3, C, H3, W3), dtype=jnp.float32)
    out3 = channel_attention(x3, w1, b1, w2, b2, max_tile_hw=128)
    out3 = jax.block_until_ready(out3)
    ref3 = channel_attention_ref(x3, w1, b1, w2, b2)
    assert jnp.allclose(out3, ref3, atol=1e-5, rtol=1e-5), "mismatch (masked)"

    print("KERNEL_OK")
</pallas_src>

<mosaic_0001>
module attributes {stable_mosaic.version = 11 : i64} {
  func.func @channel_attention_kernel(%arg0: i32, %arg1: i32, %arg2: memref<2x64x256xf32, #tpu.memory_space<vmem>>, %arg3: memref<64x4xf32, #tpu.memory_space<vmem>>, %arg4: memref<1x4xf32, #tpu.memory_space<vmem>>, %arg5: memref<4x64xf32, #tpu.memory_space<vmem>>, %arg6: memref<1x64xf32, #tpu.memory_space<vmem>>, %arg7: memref<2x64xf32, #tpu.memory_space<vmem>>, %arg8: memref<2x64x128xf32, #tpu.memory_space<vmem>>) attributes {dimension_semantics = [#tpu.dimension_semantics<parallel>, #tpu.dimension_semantics<arbitrary>], iteration_bounds = array<i64: 1, 1>, scalar_prefetch = 0 : i64, scratch_operands = 1 : i64, tpu.core_type = #tpu.core_type<tc>, window_params = [{transform_indices = @transform_0, window_bounds = array<i64: 2, 64, 256>}, {pipeline_mode = #tpu.pipeline_mode<synchronous>, transform_indices = @transform_1, window_bounds = array<i64: 64, 4>}, {pipeline_mode = #tpu.pipeline_mode<synchronous>, transform_indices = @transform_2, window_bounds = array<i64: 1, 4>}, {pipeline_mode = #tpu.pipeline_mode<synchronous>, transform_indices = @transform_3, window_bounds = array<i64: 4, 64>}, {pipeline_mode = #tpu.pipeline_mode<synchronous>, transform_indices = @transform_4, window_bounds = array<i64: 1, 64>}, {transform_indices = @transform_5, window_bounds = array<i64: 2, 64>}]} {
    %c0_i32 = arith.constant 0 : i32
    %0 = arith.cmpi eq, %arg1, %c0_i32 : i32
    %1 = arith.extui %0 : i1 to i32
    %c0_i32_0 = arith.constant 0 : i32
    %2 = arith.cmpi ne, %1, %c0_i32_0 : i32
    scf.if %2 {
      %cst = arith.constant 0.000000e+00 : f32
      %14 = vector.broadcast %cst : f32 to vector<2x64x128xf32>
      %c0_19 = arith.constant 0 : index
      %c0_20 = arith.constant 0 : index
      %c0_21 = arith.constant 0 : index
      %15 = vector.load %arg8[%c0_19, %c0_20, %c0_21] : memref<2x64x128xf32, #tpu.memory_space<vmem>>, vector<2x64x128xf32>
      tpu.vector_store %arg8[%c0_19, %c0_20, %c0_21], %14 {strides = array<i32>} : memref<2x64x128xf32, #tpu.memory_space<vmem>>, vector<2x64x128xf32>,
    } else {
    }
    %c0 = arith.constant 0 : index
    %c0_1 = arith.constant 0 : index
    %c0_2 = arith.constant 0 : index
    %3 = vector.load %arg8[%c0, %c0_1, %c0_2] : memref<2x64x128xf32, #tpu.memory_space<vmem>>, vector<2x64x128xf32>
    %c0_3 = arith.constant 0 : index
    %c0_4 = arith.constant 0 : index
    %c0_5 = arith.constant 0 : index
    %4 = vector.load %arg2[%c0_3, %c0_4, %c0_5] : memref<2x64x256xf32, #tpu.memory_space<vmem>>, vector<2x64x128xf32>
    %5 = arith.addf %3, %4 : vector<2x64x128xf32>
    %c0_6 = arith.constant 0 : index
    %c0_7 = arith.constant 0 : index
    %c0_8 = arith.constant 0 : index
    %6 = vector.load %arg8[%c0_6, %c0_7, %c0_8] : memref<2x64x128xf32, #tpu.memory_space<vmem>>, vector<2x64x128xf32>
    tpu.vector_store %arg8[%c0_6, %c0_7, %c0_8], %5 {strides = array<i32>} : memref<2x64x128xf32, #tpu.memory_space<vmem>>, vector<2x64x128xf32>,
    %c0_9 = arith.constant 0 : index
    %c0_10 = arith.constant 0 : index
    %c0_11 = arith.constant 0 : index
    %7 = vector.load %arg8[%c0_9, %c0_10, %c0_11] : memref<2x64x128xf32, #tpu.memory_space<vmem>>, vector<2x64x128xf32>
    %c0_12 = arith.constant 0 : index
    %c0_13 = arith.constant 0 : index
    %c128 = arith.constant 128 : index
    %8 = vector.load %arg2[%c0_12, %c0_13, %c128] : memref<2x64x256xf32, #tpu.memory_space<vmem>>, vector<2x64x128xf32>
    %9 = arith.addf %7, %8 : vector<2x64x128xf32>
    %c0_14 = arith.constant 0 : index
    %c0_15 = arith.constant 0 : index
    %c0_16 = arith.constant 0 : index
    %10 = vector.load %arg8[%c0_14, %c0_15, %c0_16] : memref<2x64x128xf32, #tpu.memory_space<vmem>>, vector<2x64x128xf32>
    tpu.vector_store %arg8[%c0_14, %c0_15, %c0_16], %9 {strides = array<i32>} : memref<2x64x128xf32, #tpu.memory_space<vmem>>, vector<2x64x128xf32>,
    %c0_i32_17 = arith.constant 0 : i32
    %11 = arith.cmpi eq, %arg1, %c0_i32_17 : i32
    %12 = arith.extui %11 : i1 to i32
    %c0_i32_18 = arith.constant 0 : i32
    %13 = arith.cmpi ne, %12, %c0_i32_18 : i32
    scf.if %13 {
      %c0_19 = arith.constant 0 : index
      %c0_20 = arith.constant 0 : index
      %c0_21 = arith.constant 0 : index
      %14 = vector.load %arg8[%c0_19, %c0_20, %c0_21] : memref<2x64x128xf32, #tpu.memory_space<vmem>>, vector<2x64x128xf32>
      %cst = arith.constant dense<0.000000e+00> : vector<2x64xf32>
      %15 = vector.multi_reduction <add>, %14, %cst [2] : vector<2x64x128xf32> to vector<2x64xf32>
      %cst_22 = arith.constant 3.906250e-03 : f32
      %16 = vector.broadcast %cst_22 : f32 to vector<2x64xf32>
      %17 = arith.mulf %15, %16 : vector<2x64xf32>
      %c0_23 = arith.constant 0 : index
      %c0_24 = arith.constant 0 : index
      %18 = vector.load %arg3[%c0_23, %c0_24] : memref<64x4xf32, #tpu.memory_space<vmem>>, vector<64x4xf32>
      %cst_25 = arith.constant dense<0.000000e+00> : vector<2x4xf32>
      %19 = tpu.matmul %17, %18, %cst_25 {dimension_numbers = #tpu.dot_dimension_numbers<[1], [0], [0], [1], [0, 0, 1, 1], [], []>} : vector<2x64xf32>, vector<64x4xf32>, vector<2x4xf32> -> vector<2x4xf32>
      %c0_26 = arith.constant 0 : index
      %c0_27 = arith.constant 0 : index
      %20 = vector.load %arg4[%c0_26, %c0_27] : memref<1x4xf32, #tpu.memory_space<vmem>>, vector<1x4xf32>
      %21 = vector.broadcast %20 : vector<1x4xf32> to vector<2x4xf32>
      %22 = arith.addf %19, %21 : vector<2x4xf32>
      %cst_28 = arith.constant 0.000000e+00 : f32
      %23 = vector.broadcast %cst_28 : f32 to vector<2x4xf32>
      %24 = arith.maximumf %22, %23 : vector<2x4xf32>
      %c0_29 = arith.constant 0 : index
      %c0_30 = arith.constant 0 : index
      %25 = vector.load %arg5[%c0_29, %c0_30] : memref<4x64xf32, #tpu.memory_space<vmem>>, vector<4x64xf32>
      %cst_31 = arith.constant dense<0.000000e+00> : vector<2x64xf32>
      %26 = tpu.matmul %24, %25, %cst_31 {dimension_numbers = #tpu.dot_dimension_numbers<[1], [0], [0], [1], [0, 0, 1, 1], [], []>} : vector<2x4xf32>, vector<4x64xf32>, vector<2x64xf32> -> vector<2x64xf32>
      %c0_32 = arith.constant 0 : index
      %c0_33 = arith.constant 0 : index
      %27 = vector.load %arg6[%c0_32, %c0_33] : memref<1x64xf32, #tpu.memory_space<vmem>>, vector<1x64xf32>
      %28 = vector.broadcast %27 : vector<1x64xf32> to vector<2x64xf32>
      %29 = arith.addf %26, %28 : vector<2x64xf32>
      %30 = arith.negf %29 : vector<2x64xf32>
      %31 = math.exp %30 : vector<2x64xf32>
      %cst_34 = arith.constant 1.000000e+00 : f32
      %32 = vector.broadcast %cst_34 : f32 to vector<2x64xf32>
      %33 = arith.addf %32, %31 : vector<2x64xf32>
      %34 = arith.divf %32, %33 : vector<2x64xf32>
      %c0_35 = arith.constant 0 : index
      %c0_36 = arith.constant 0 : index
      %35 = vector.load %arg7[%c0_35, %c0_36] : memref<2x64xf32, #tpu.memory_space<vmem>>, vector<2x64xf32>
      tpu.vector_store %arg7[%c0_35, %c0_36], %34 {strides = array<i32>} : memref<2x64xf32, #tpu.memory_space<vmem>>, vector<2x64xf32>,
    } else {
    }
    return
  }
  func.func @transform_0(%arg0: i32, %arg1: i32) -> (i32, i32, i32) {
    %c0_i32 = arith.constant 0 : i32
    %c0_i32_0 = arith.constant 0 : i32
    return %arg0, %c0_i32, %arg1 : i32, i32, i32
  }
  func.func @transform_1(%arg0: i32, %arg1: i32) -> (i32, i32) {
    %c0_i32 = arith.constant 0 : i32
    %c0_i32_0 = arith.constant 0 : i32
    %c0_i32_1 = arith.constant 0 : i32
    return %c0_i32, %c0_i32_0 : i32, i32
  }
  func.func @transform_2(%arg0: i32, %arg1: i32) -> (i32, i32) {
    %c0_i32 = arith.constant 0 : i32
    %c0_i32_0 = arith.constant 0 : i32
    %c0_i32_1 = arith.constant 0 : i32
    return %c0_i32, %c0_i32_0 : i32, i32
  }
  func.func @transform_3(%arg0: i32, %arg1: i32) -> (i32, i32) {
    %c0_i32 = arith.constant 0 : i32
    %c0_i32_0 = arith.constant 0 : i32
    %c0_i32_1 = arith.constant 0 : i32
    return %c0_i32, %c0_i32_0 : i32, i32
  }
  func.func @transform_4(%arg0: i32, %arg1: i32) -> (i32, i32) {
    %c0_i32 = arith.constant 0 : i32
    %c0_i32_0 = arith.constant 0 : i32
    %c0_i32_1 = arith.constant 0 : i32
    return %c0_i32, %c0_i32_0 : i32, i32
  }
  func.func @transform_5(%arg0: i32, %arg1: i32) -> (i32, i32) {
    %c0_i32 = arith.constant 0 : i32
    %c0_i32_0 = arith.constant 0 : i32
    return %arg0, %c0_i32 : i32, i32
  }
}

</mosaic_0001>

<bundles_post_ra>
// kernel: tpu_custom_call.1
= control target key start
LH: loop header
LB: loop body
LE: loop exit
PB: predicated region body
PF: predicated region fallthrough
CT: control target
= control target key end

     0   :  { %10 = vsyncpa [#allocation4], 0  ;;  %s570_s0 = inlined_call_operand.hbm [shape: f32[2,64,256], index: 0, kind: input, shape index: {}]   ;;  %s571_s1 = inlined_call_operand.vmem [shape: f32[64,4], index: 1, kind: input, shape index: {}]   ;;  %s572_s2 = inlined_call_operand.vmem [shape: f32[1,4], index: 2, kind: input, shape index: {}]   ;;  %s573_s3 = inlined_call_operand.vmem [shape: f32[4,64], index: 3, kind: input, shape index: {}]   ;;  %s574_s4 = inlined_call_operand.vmem [shape: f32[1,64], index: 4, kind: input, shape index: {}]   ;;  %s575_s5 = inlined_call_operand.hbm [shape: f32[2,64], index: 5, kind: output, shape index: {}]  }
   0x1   :  { %11 = vsyncpa [#allocation5], 0  ;;  %s16_s20 = sshll.u32 %s570_s0, 4  ;;  %s489_s21 = smov [#allocation3]   ;;  %s17_s20 = int_to_ptr.hbm [resolvable:$true] %s16_s20 }
   0x2   :  { %s18_s22 = sshll.u32 %s489_s21, 4  ;;  %s490_s23 = smov 256   ;;  %s19_s22 = int_to_ptr.vmem [resolvable:$true] %s18_s22 }
   0x3   :  { %s491_s24 = smov 16  }
   0x4   :  { %24 = dma.hbm_to_vmem [thread:$0]  %s17_s20, 4096, %s19_s22, [#allocation4], %s490_s23, %s490_s23, %s491_s24  }
   0x5   :  { %485 = dma.done.wait [#allocation4], 4096  }
   0x6   :  { %486 = vsyncadd [#allocation4], 4294963200  ;;  %v81_v0 = vld [vmem:[#allocation3 + $0x80] sm:$0xff]  ;;  %v145_v1 = vld [vmem:[#allocation3 + $0x88] sm:$0xff]  ;;  %vm285_vm0 = vcmask 130112   ;;  %vm289_vm1 = vcmask 195712  }
   0x7   :  { %v73_v2 = vld [vmem:[#allocation3] sm:$0xff]  ;;  %v161_v3 = vadd.f32 %v145_v1, %v81_v0  ;;  %v137_v4 = vld [vmem:[#allocation3 + $0x8] sm:$0xff]  ;;  %v82_v9 = vld [vmem:[#allocation3 + $0x90] sm:$0xff]  ;;  %v280_v1 = vlaneseq  ;;  %vm293_vm2 = vcmask 261312   ;;  %vm297_vm3 = vcmask 326912  }
   0x8   :  { %v75_v5 = vld [vmem:[#allocation3 + $0x20] sm:$0xff]  ;;  %v139_v6 = vld [vmem:[#allocation3 + $0x28] sm:$0xff]  ;;  %v153_v7 = vadd.f32 %v137_v4, %v73_v2  ;;  %v146_v10 = vld [vmem:[#allocation3 + $0x98] sm:$0xff]  ;;  %vm301_vm4 = vcmask 392512   ;;  %vm305_vm5 = vcmask 458112   ;;  %vm309_vm6 = vcmask 523712  }
   0x9   :  { %v155_v8 = vadd.f32 %v139_v6, %v75_v5  ;;  %220 = vadd.xlane.f32.xlu1 %v161_v3  ;;  %v74_v11 = vld [vmem:[#allocation3 + $0x10] sm:$0xff]  ;;  %v138_v12 = vld [vmem:[#allocation3 + $0x18] sm:$0xff]  ;;  %v83_v13 = vld [vmem:[#allocation3 + $0xa0] sm:$0xff]  ;;  %v162_v15 = vadd.f32 %v146_v10, %v82_v9  ;;  %v281_v2 = vand.u32 127, %v280_v1  ;;  %vm326_vm7 = vcmask 1041409  }
   0xa   :  { %204 = vadd.xlane.f32.xlu0 %v153_v7  ;;  %v147_v14 = vld [vmem:[#allocation3 + $0xa8] sm:$0xff]  ;;  %v154_v16 = vadd.f32 %v138_v12, %v74_v11  ;;  %v84_v18 = vld [vmem:[#allocation3 + $0xb0] sm:$0xff]  ;;  %v148_v19 = vld [vmem:[#allocation3 + $0xb8] sm:$0xff]  ;;  %vm328_vm8 = vcmask 523264   ;;  %vm361_vm9 = vcmask 1043456   ;;  %vm357_vm10 = vcmask 31744  }
   0xb   :  { %208 = vadd.xlane.f32.xlu2 %v155_v8  ;;  %v163_v17 = vadd.f32 %v147_v14, %v83_v13  ;;  %v76_v20 = vld [vmem:[#allocation3 + $0x30] sm:$0xff]  ;;  %v140_v21 = vld [vmem:[#allocation3 + $0x38] sm:$0xff]  ;;  %v77_v22 = vld [vmem:[#allocation3 + $0x40] sm:$0xff]  ;;  %v164_v24 = vadd.f32 %v148_v19, %v84_v18  ;;  %v283_v6 = vadd.s32 4294967288, %v281_v2  ;;  %v287_v11 = vadd.s32 4294967280, %v281_v2 }
   0xc   :  { %v141_v23 = vld [vmem:[#allocation3 + $0x48] sm:$0xff]  ;;  %v156_v25 = vadd.f32 %v140_v21, %v76_v20  ;;  %v78_v27 = vld [vmem:[#allocation3 + $0x50] sm:$0xff]  ;;  %v142_v28 = vld [vmem:[#allocation3 + $0x58] sm:$0xff]  ;;  %v291_v14 = vadd.s32 4294967272, %v281_v2  ;;  %vm404_vm14 = vcmask 517120  }
   0xd   :  { %v157_v26 = vadd.f32 %v141_v23, %v77_v22  ;;  %v85_v29 = vld [vmem:[#allocation3 + $0xc0] sm:$0xff]  ;;  %v149_v30 = vld [vmem:[#allocation3 + $0xc8] sm:$0xff]  ;;  %v86_v31 = vld [vmem:[#allocation3 + $0xd0] sm:$0xff]  ;;  %v158_v33 = vadd.f32 %v142_v28, %v78_v27  ;;  %v295_v22 = vadd.s32 4294967264, %v281_v2  ;;  %v299_v28 = vadd.s32 4294967256, %v281_v2 }
   0xe   :  { %v150_v32 = vld [vmem:[#allocation3 + $0xd8] sm:$0xff]  ;;  %v165_v34 = vadd.f32 %v149_v30, %v85_v29  ;;  %v87_v36 = vld [vmem:[#allocation3 + $0xe0] sm:$0xff]  ;;  %v151_v37 = vld [vmem:[#allocation3 + $0xe8] sm:$0xff] }
   0xf   :  { %v166_v35 = vadd.f32 %v150_v32, %v86_v31  ;;  %v79_v38 = vld [vmem:[#allocation3 + $0x60] sm:$0xff]  ;;  %v143_v39 = vld [vmem:[#allocation3 + $0x68] sm:$0xff]  ;;  %v80_v40 = vld [vmem:[#allocation3 + $0x70] sm:$0xff]  ;;  %v167_v42 = vadd.f32 %v151_v37, %v87_v36  ;;  %v303_v32 = vadd.s32 4294967248, %v281_v2 }
  0x10   :  { %v144_v41 = vld [vmem:[#allocation3 + $0x78] sm:$0xff]  ;;  %v159_v43 = vadd.f32 %v143_v39, %v79_v38  ;;  %v88_v45 = vld [vmem:[#allocation3 + $0xf0] sm:$0xff]  ;;  %v257_v53 = vld [vmem:[%s571_s1 + $0x28] sm:$0xff] }
  0x11   :  { %222 = vadd.xlane.f32.xlu1 %v162_v15  ;;  %v160_v44 = vadd.f32 %v144_v41, %v80_v40  ;;  %v152_v46 = vld [vmem:[#allocation3 + $0xf8] sm:$0xff]  ;;  %v258_v52 = vld [vmem:[%s571_s1 + $0x30] sm:$0xff]  ;;  %v256_v54 = vld [vmem:[%s571_s1 + $0x20] sm:$0xff] }
  0x12   :  { %206 = vadd.xlane.f32.xlu0 %v154_v16  ;;  %v168_v47 = vadd.f32 %v152_v46, %v88_v45  ;;  %v259_v48 = vld [vmem:[%s571_s1 + $0x38] sm:$0xff]  ;;  %v254_v59 = vld [vmem:[%s571_s1 + $0x10] sm:$0xff]  ;;  %v253_v60 = vld [vmem:[%s571_s1 + $0x8] sm:$0xff] }
  0x13   :  { %224 = vadd.xlane.f32.xlu2 %v163_v17  ;;  %339 = vmatpush.msra.mxu0 %v259_v48  ;;  %v255_v55 = vld [vmem:[%s571_s1 + $0x18] sm:$0xff]  ;;  %v252_v61 = vld [vmem:[%s571_s1] sm:$0xff] }
  0x14   :  { %v431_v1 = vld [vmem:[%s572_s2] ss:$0 sm:$0xff]  ;;  %s492_s2 = smov [#allocation6]  }
  0x15   :  { %340 = vmatpush.msra.mxu0 %v258_v52 }
  0x17   :  { %341 = vmatpush.msra.mxu0 %v257_v53 }
  0x19   :  { %226 = vadd.xlane.f32.xlu1 %v164_v24  ;;  %342 = vmatpush.msra.mxu0 %v256_v54 }
  0x1a   :  { %210 = vadd.xlane.f32.xlu0 %v156_v25 }
  0x1b   :  { %212 = vadd.xlane.f32.xlu2 %v157_v26  ;;  %343 = vmatpush.msra.mxu0 %v255_v55 }
  0x1d   :  { %344 = vmatpush.msra.mxu0 %v254_v59 }
  0x1f   :  { %345 = vmatpush.msra.mxu0 %v253_v60 }
  0x21   :  { %214 = vadd.xlane.f32.xlu1 %v158_v33  ;;  %346 = vmatpush.msra.mxu0 %v252_v61 }
  0x22   :  { %228 = vadd.xlane.f32.xlu0 %v165_v34 }
  0x23   :  { %230 = vadd.xlane.f32.xlu2 %v166_v35 }
  0x29   :  { %232 = vadd.xlane.f32.xlu1 %v167_v42 }
  0x2a   :  { %216 = vadd.xlane.f32.xlu0 %v159_v43 }
  0x2b   :  { %218 = vadd.xlane.f32.xlu2 %v160_v44  ;;  %v307_v44 = vadd.s32 4294967240, %v281_v2 }
  0x32   :  { %234 = vadd.xlane.f32.xlu0 %v168_v47 }
  0x7c   :  { %v221_v49 = vpop.xlane.xlu1 %220 }
  0x7d   :  { %v205_v50 = vpop.xlane.xlu0 %204  ;;  %v244_v8 = vmul.f32 0.00390625, %v221_v49 }
  0x7e   :  { %v209_v51 = vpop.xlane.xlu2 %208  ;;  %v236_v9 = vmul.f32 0.00390625, %v205_v50 }
  0x7f   :  { %v238_v12 = vmul.f32 0.00390625, %v209_v51  ;;  %v311_v17 = vperm.slane %v244_v8, %v281_v2 }
  0x80   :  { %v282_v18 = vperm.slane %v236_v9, %v281_v2 }
  0x81   :  { %v288_v21 = vperm.slane %v238_v12, %v287_v11 }
  0x84   :  { %v223_v56 = vpop.xlane.xlu1 %222 }
  0x85   :  { %v207_v57 = vpop.xlane.xlu0 %206  ;;  %v245_v10 = vmul.f32 0.00390625, %v223_v56 }
  0x86   :  { %v225_v58 = vpop.xlane.xlu2 %224  ;;  %v237_v7 = vmul.f32 0.00390625, %v207_v57 }
  0x87   :  { %v246_v16 = vmul.f32 0.00390625, %v225_v58  ;;  %v312_v19 = vperm.slane %v245_v10, %v283_v6 }
  0x88   :  { %v284_v13 = vperm.slane %v237_v7, %v283_v6 }
  0x89   :  { %v314_v31 = vperm.slane %v246_v16, %v287_v11  ;;  %v313_v35 = vsel %vm285_vm0, %v312_v19, %v311_v17 }
  0x8a   :  { %v286_v26 = vsel %vm285_vm0, %v284_v13, %v282_v18 }
  0x8b   :  { %v290_v38 = vsel %vm289_vm1, %v288_v21, %v286_v26  ;;  %v315_v46 = vsel %vm289_vm1, %v314_v31, %v313_v35 }
  0x8c   :  { %v227_v62 = vpop.xlane.xlu1 %226 }
  0x8d   :  { %v211_v63 = vpop.xlane.xlu0 %210  ;;  %v247_v20 = vmul.f32 0.00390625, %v227_v62 }
  0x8e   :  { %v213_v0 = vpop.xlane.xlu2 %212  ;;  %v239_v15 = vmul.f32 0.00390625, %v211_v63 }
  0x8f   :  { %v240_v23 = vmul.f32 0.00390625, %v213_v0  ;;  %v316_v36 = vperm.slane %v247_v20, %v291_v14  ;;  %v352_v0 = vld [vmem:[%s573_s3] sm:$0xf]  ;;  %s411_s3 = sshll.u32 %s492_s2, 4  ;;  %s412_s3 = int_to_ptr.vmem [resolvable:$true] %s411_s3 }
  0x90   :  { %v292_v27 = vperm.slane %v239_v15, %v291_v14  ;;  %424 = vmatpush.msk.msra.mxu1 %vm361_vm9, %v352_v0 }
  0x91   :  { %v296_v39 = vperm.slane %v240_v23, %v295_v22  ;;  %v317_v48 = vsel %vm293_vm2, %v316_v36, %v315_v46 }
  0x92   :  { %v294_v42 = vsel %vm293_vm2, %v292_v27, %v290_v38 }
  0x93   :  { %v298_v50 = vsel %vm297_vm3, %v296_v39, %v294_v42 }
  0x94   :  { %v215_v3 = vpop.xlane.xlu1 %214 }
  0x95   :  { %v229_v4 = vpop.xlane.xlu0 %228  ;;  %v241_v29 = vmul.f32 0.00390625, %v215_v3 }
  0x96   :  { %v231_v5 = vpop.xlane.xlu2 %230  ;;  %v248_v24 = vmul.f32 0.00390625, %v229_v4 }
  0x97   :  { %v249_v37 = vmul.f32 0.00390625, %v231_v5  ;;  %v300_v43 = vperm.slane %v241_v29, %v299_v28  ;;  %v432_v5 = vld [vmem:[%s574_s4] ss:$0 sm:$0xff]  ;;  %s413_s4 = sshll.u32 %s575_s5, 4  ;;  %s414_s4 = int_to_ptr.hbm [resolvable:$true] %s413_s4 }
  0x98   :  { %v318_v40 = vperm.slane %v248_v24, %v295_v22 }
  0x99   :  { %v320_v49 = vperm.slane %v249_v37, %v299_v28  ;;  %v302_v54 = vsel %vm301_vm4, %v300_v43, %v298_v50 }
  0x9a   :  { %v319_v51 = vsel %vm297_vm3, %v318_v40, %v317_v48 }
  0x9b   :  { %v321_v58 = vsel %vm301_vm4, %v320_v49, %v319_v51 }
  0x9c   :  { %v233_v30 = vpop.xlane.xlu1 %232 }
  0x9d   :  { %v217_v25 = vpop.xlane.xlu0 %216  ;;  %v250_v41 = vmul.f32 0.00390625, %v233_v30 }
  0x9e   :  { %v242_v33 = vmul.f32 0.00390625, %v217_v25  ;;  %v219_v34 = vpop.xlane.xlu2 %218 }
  0x9f   :  { %v243_v45 = vmul.f32 0.00390625, %v219_v34  ;;  %v322_v52 = vperm.slane %v250_v41, %v303_v32 }
  0xa0   :  { %v304_v47 = vperm.slane %v242_v33, %v303_v32 }
  0xa1   :  { %v308_v55 = vperm.slane %v243_v45, %v307_v44  ;;  %v323_v60 = vsel %vm305_vm5, %v322_v52, %v321_v58 }
  0xa2   :  { %v306_v57 = vsel %vm305_vm5, %v304_v47, %v302_v54 }
  0xa3   :  { %v310_v61 = vsel %vm309_vm6, %v308_v55, %v306_v57 }
  0xa5   :  { %v235_v53 = vpop.xlane.xlu0 %234 }
  0xa6   :  { %v251_v56 = vmul.f32 0.00390625, %v235_v53 }
  0xa8   :  { %v324_v59 = vperm.slane %v251_v56, %v307_v44 }
  0xaa   :  { %v325_v62 = vsel %vm309_vm6, %v324_v59, %v323_v60 }
  0xab   :  { %v327_v63 = vsel %vm326_vm7, %v325_v62, %v310_v61 }
  0xac   :  { %423 = vmatmul.msk.f32.vlgmr.msra.gmra.mxu0 %vm328_vm8, %v327_v63 }
 0x129   :  { %v348_v2 = vpop.f32.mrf.mxu0 }
 0x12a   :  { %v349_v3 = vadd.f32 %v431_v1, %v348_v2 }
 0x12c   :  { %v351_v4 = vmax.f32 %v349_v3, 0.0 }
 0x12e   :  { %425 = vmatmul.msk.f32.vlgmr.msra.gmra.mxu1 %vm357_vm10, %v351_v4 }
 0x1ab   :  { %v382_v6 = vpop.f32.mrf.mxu1 }
 0x1ac   :  { %v383_v7 = vadd.f32 %v432_v5, %v382_v6 }
 0x1ae   :  { %v426_v8 = vmul.f32 -1.442695, %v383_v7 }
 0x1b0   :  { %433 = vpow2.f32 %v426_v8 }
 0x1b6   :  { %v434_v9 = vpop.eup %433 }
 0x1b7   :  { %v388_v10 = vadd.f32 1.0, %v434_v9 }
 0x1b9   :  { %435 = vrcp.f32 %v388_v10  ;;  %v400_v14 = vand.u32 2147483648, %v388_v10  ;;  %v398_v16 = vand.u32 2147483647, %v388_v10  ;;  %vm394_vm12 = vweird.f32 %v388_v10 }
 0x1bb   :  { %v401_v18 = vor.u32 1.1754944e-38, %v400_v14  ;;  %vm399_vm15 = vcmp.eq.f32.partialorder %v398_v16, 8.507059e+37 }
 0x1bf   :  { %v436_v11 = vpop.eup %435 }
 0x1c0   :  { %v390_v12 = vmul.f32 %v436_v11, %v388_v10  ;;  %vm395_vm11 = vweird.f32 %v436_v11 }
 0x1c1   :  { %vm396_vm13 = vmor %vm394_vm12, %vm395_vm11 }
 0x1c2   :  { %v391_v13 = vsub.f32 1.0, %v390_v12 }
 0x1c4   :  { %v392_v15 = vmul.f32 %v436_v11, %v391_v13 }
 0x1c6   :  { %v393_v17 = vadd.f32 %v436_v11, %v392_v15 }
 0x1c8   :  { %v397_v19 = vsel %vm396_vm13, %v436_v11, %v393_v17 }
 0x1c9   :  { %v402_v20 = vsel %vm399_vm15, %v401_v18, %v397_v19 }
 0x1ca   :  { %405 = vst.msk [vmem:[#allocation6] sm:$0x3] %vm404_vm14, %v402_v20 }
 0x1cb   :  { %416 = dma.vmem_to_hbm [thread:$0]  %s412_s3, 32, %s414_s4, [#allocation5]  }
 0x1cc   :  { %487 = dma.done.wait [#allocation5], 32  }
 0x1cd   :  { %488 = vsyncadd [#allocation5], 4294967264 }
 0x1ce   :  { %421 = vsyncpa [#allocation4], 1 }
 0x1cf   :  { %422 = vsyncpa [#allocation5], 1 }

</bundles_post_ra>
